<compile_context>
chip_gen: v7x
topology: tpu7x:2x2x1
jax: 0.10.0
libtpu: 0.0.40
codegen_flags: <defaults>
</compile_context>

<pallas_src>
import functools

import jax
import jax.numpy as jnp
from jax import lax
from jax.experimental import pallas as pl
from jax.experimental.pallas import tpu as pltpu


def _kl_kernel(prob_ref, logits_ref, loss_out_ref, len_out_ref,
               loss_acc, len_acc, *, total_rows, row_tile, inner_steps,
               tail_free):
    c = pl.program_id(0)            # outer (parallel) split
    j = pl.program_id(1)            # inner (arbitrary / reduction) step

    @pl.when(j == 0)
    def _():
        loss_acc[...] = jnp.zeros_like(loss_acc)
        len_acc[...] = jnp.zeros_like(len_acc)

    prob = prob_ref[...].astype(jnp.float32)
    logits = logits_ref[...].astype(jnp.float32)

    if not tail_free:
        # Global step + tail-row mask (grid/index_map may be clamped & padded).
        # The logits mask is load-bearing: the OOB tail of the last block is
        # undefined data (0 * inf = NaN without it).
        step = c * inner_steps + j
        row0 = step * row_tile
        row_ids = lax.broadcasted_iota(jnp.int32, (row_tile, 1), 0) + row0
        valid = row_ids < total_rows                               # (row_tile, 1)
        prob = jnp.where(valid, prob, 0.0)
        logits = jnp.where(valid, logits, 0.0)

    # Fused log-softmax: log softmax(logits) = logits - lse  (single exp/elem).
    m = jnp.max(logits, axis=-1, keepdims=True)
    lse = m + jnp.log(jnp.sum(jnp.exp(logits - m), axis=-1, keepdims=True))

    # -prob * log(pred) = prob * (lse - logits).  Fold the row_tile rows down to
    # an (8, C) partial with a leading-axis sum (layout-preserving reshape ->
    # vreg + vreg VPU adds), then accumulate into the tiny scratch.
    prod = prob * (lse - logits)                                   # (row_tile, C)
    loss_acc[...] += jnp.sum(prod.reshape(row_tile // 8, 8, prod.shape[-1]),
                             axis=0)

    row_psum = jnp.sum(prob, axis=-1, keepdims=True)               # (row_tile, 1)
    cnt = (row_psum > 0.001).astype(jnp.float32)
    len_acc[...] += jnp.sum(cnt.reshape(row_tile // 8, 8, 1), axis=0)

    @pl.when(j == inner_steps - 1)
    def _():
        # Lane-dense (1, 128) partial-sum slabs per outer split; the tiny final
        # reduction + divide happens in the JAX wrapper.
        loss_out_ref[...] = jnp.zeros((1, 128), jnp.float32) + jnp.sum(loss_acc[...])
        len_out_ref[...] = jnp.zeros((1, 128), jnp.float32) + jnp.sum(len_acc[...])


def _tpu_caps():
    """Best-effort (VMEM capacity, num TensorCores) query; safe fallbacks."""
    kind = ""
    try:
        kind = jax.devices()[0].device_kind.lower()
    except Exception:
        pass
    is_v7 = "v7" in kind
    vmem_cap = (64 << 20) if is_v7 else (128 << 20)
    try:
        vmem_cap = int(pltpu.get_tpu_info().vmem_capacity_bytes)
    except Exception:
        pass
    n_tc = 2 if is_v7 else 1
    return vmem_cap, n_tc


def kl_divergence(prob, logits, *, row_tile=None, n_split=None):
    assert prob.shape == logits.shape
    C = prob.shape[-1]
    prob2 = prob.reshape(-1, C)
    logits2 = logits.reshape(-1, C)
    R = prob2.shape[0]

    item_p = jnp.dtype(prob2.dtype).itemsize
    item_l = jnp.dtype(logits2.dtype).itemsize
    min_item = min(item_p, item_l)
    mult = max(8, 32 // max(1, min_item))        # sublane packing (bf16->16, i8->32)
    C_pad = ((C + 127) // 128) * 128             # lane-padded width (real VMEM cost)
    padded_R = ((R + mult - 1) // mult) * mult

    vmem_cap, n_tc = _tpu_caps()
    # ~48 MiB ceiling on v7x (64 MiB physical), ~96 MiB on v5e/v6e (128 MiB).
    safe_vmem = min(3 * vmem_cap // 4, 96 << 20)
    target_bytes = (4 << 20) if vmem_cap >= (96 << 20) else (2 << 20)

    if row_tile is None:
        rt = max(mult, target_bytes // max(1, C_pad * max(item_p, item_l)))
        rt = min(rt, 8192)                       # raised from 1024 (perf review)
        rt = max(mult, (rt // mult) * mult)
        rt = min(rt, padded_R)
        row_tile = int(rt)
    else:
        row_tile = max(mult, (int(row_tile) // mult) * mult)
        row_tile = min(row_tile, padded_R)

    # Shrink row_tile if double-buffered (lane-padded) blocks would blow the cap.
    def _vmem_needed(rt):
        blocks = 2 * rt * C_pad * (item_p + item_l)        # 2 pipeline bufs / input
        scratch = 8 * C_pad * 4 + 8 * 128 * 4              # (8,C) + (8,1) f32 acc
        return blocks + scratch + (4 << 20)                # outputs + headroom

    while _vmem_needed(row_tile) > safe_vmem and row_tile > mult:
        row_tile = max(mult, ((row_tile // 2) // mult) * mult)

    total_steps = (R + row_tile - 1) // row_tile
    if n_split is None:
        n_split = n_tc if total_steps >= n_tc else 1       # 2-way only on v7x

    # Balance the parallel split when possible (avoids clamped duplicate-DMA
    # tail steps on v7x); fall back to clamping + masking if no nearby tile fits.
    if n_split > 1 and total_steps % n_split != 0:
        for cand in range(row_tile, max(mult, row_tile - 8 * mult) - 1, -mult):
            if ((R + cand - 1) // cand) % n_split == 0:
                row_tile = cand
                total_steps = (R + cand - 1) // cand
                break

    inner_steps = (total_steps + n_split - 1) // n_split
    tail_free = (R % row_tile == 0) and (total_steps % n_split == 0)

    if tail_free:
        def in_map(c, j):
            return (c * inner_steps + j, 0)
    else:
        def in_map(c, j):
            # Clamp so the padded tail of the grid re-reads the last block;
            # the in-kernel row mask zeroes any rows >= R.
            return (jnp.minimum(c * inner_steps + j, total_steps - 1), 0)

    vmem_limit = int(min(max(_vmem_needed(row_tile), 16 << 20), safe_vmem))

    kernel = functools.partial(_kl_kernel, total_rows=R, row_tile=row_tile,
                               inner_steps=inner_steps, tail_free=tail_free)

    part_loss, part_len = pl.pallas_call(
        kernel,
        out_shape=(jax.ShapeDtypeStruct((n_split, 128), jnp.float32),
                   jax.ShapeDtypeStruct((n_split, 128), jnp.float32)),
        grid_spec=pltpu.PrefetchScalarGridSpec(
            num_scalar_prefetch=0,
            grid=(n_split, inner_steps),
            in_specs=[pl.BlockSpec((row_tile, C), in_map),
                      pl.BlockSpec((row_tile, C), in_map)],
            out_specs=(pl.BlockSpec((1, 128), lambda c, j: (c, 0)),
                       pl.BlockSpec((1, 128), lambda c, j: (c, 0))),
            scratch_shapes=[pltpu.VMEM((8, C), jnp.float32),   # loss partial (8, C)
                            pltpu.VMEM((8, 1), jnp.float32)],  # length partial (8, 1)
        ),
        compiler_params=pltpu.CompilerParams(
            dimension_semantics=("parallel", "arbitrary"),
            vmem_limit_bytes=vmem_limit,
        ),
    )(prob2, logits2)

    # Final tiny reduction + divide (matches torch: sum(loss) / length).
    # NOTE: if every row has prob.sum() <= 0.001 this divides by zero, exactly
    # like the torch module.
    return jnp.sum(part_loss[:, 0]) / jnp.sum(part_len[:, 0])


def _reference(prob, logits):
    length = jnp.sum((jnp.sum(prob, -1) > 0.001).astype(jnp.float32))
    pred_prob = jax.nn.softmax(logits, -1)
    loss = -prob * jnp.log(pred_prob)
    return jnp.sum(loss) / length


if __name__ == "__main__":
    key = jax.random.PRNGKey(0)
    k1, k2, k3 = jax.random.split(key, 3)

    B, S, C = 2, 8, 32
    # prob: valid probability rows, with a few all-zero ("padding") rows that
    # must be excluded from `length`.
    raw = jax.random.uniform(k1, (B, S, C), dtype=jnp.float32)
    prob = raw / jnp.sum(raw, -1, keepdims=True)
    pad_mask = (jax.random.uniform(k3, (B, S, 1)) > 0.25).astype(jnp.float32)
    prob = prob * pad_mask

    logits = jax.random.normal(k2, (B, S, C), dtype=jnp.float32)

    out = kl_divergence(prob, logits)
    jax.block_until_ready(out)

    ref = _reference(prob, logits)
    assert jnp.allclose(out, ref, rtol=1e-5, atol=1e-5), (out, ref)

    print("KERNEL_OK")
</pallas_src>

<mosaic_0001>
module attributes {stable_mosaic.version = 11 : i64} {
  func.func @_kl_kernel(%arg0: i32, %arg1: i32, %arg2: memref<16x32xf32, #tpu.memory_space<vmem>>, %arg3: memref<16x32xf32, #tpu.memory_space<vmem>>, %arg4: memref<1x128xf32, #tpu.memory_space<vmem>>, %arg5: memref<1x128xf32, #tpu.memory_space<vmem>>, %arg6: memref<8x32xf32, #tpu.memory_space<vmem>>, %arg7: memref<8x1xf32, #tpu.memory_space<vmem>>) attributes {dimension_semantics = [#tpu.dimension_semantics<parallel>, #tpu.dimension_semantics<arbitrary>], iteration_bounds = array<i64: 1, 1>, scalar_prefetch = 0 : i64, scratch_operands = 2 : i64, tpu.core_type = #tpu.core_type<tc>, window_params = [{transform_indices = @transform_0, window_bounds = array<i64: 16, 32>}, {transform_indices = @transform_1, window_bounds = array<i64: 16, 32>}, {transform_indices = @transform_2, window_bounds = array<i64: 1, 128>}, {transform_indices = @transform_3, window_bounds = array<i64: 1, 128>}]} {
    %c0_i32 = arith.constant 0 : i32
    %0 = arith.cmpi eq, %arg1, %c0_i32 : i32
    %1 = arith.extui %0 : i1 to i32
    %c0_i32_0 = arith.constant 0 : i32
    %2 = arith.cmpi ne, %1, %c0_i32_0 : i32
    scf.if %2 {
      %cst_19 = arith.constant 0.000000e+00 : f32
      %36 = vector.broadcast %cst_19 : f32 to vector<8x32xf32>
      %c0_20 = arith.constant 0 : index
      %c0_21 = arith.constant 0 : index
      %37 = vector.load %arg6[%c0_20, %c0_21] : memref<8x32xf32, #tpu.memory_space<vmem>>, vector<8x32xf32>
      tpu.vector_store %arg6[%c0_20, %c0_21], %36 {strides = array<i32>} : memref<8x32xf32, #tpu.memory_space<vmem>>, vector<8x32xf32>,
      %cst_22 = arith.constant 0.000000e+00 : f32
      %38 = vector.broadcast %cst_22 : f32 to vector<8x1xf32>
      %c0_23 = arith.constant 0 : index
      %c0_24 = arith.constant 0 : index
      %39 = vector.load %arg7[%c0_23, %c0_24] : memref<8x1xf32, #tpu.memory_space<vmem>>, vector<8x1xf32>
      tpu.vector_store %arg7[%c0_23, %c0_24], %38 {strides = array<i32>} : memref<8x1xf32, #tpu.memory_space<vmem>>, vector<8x1xf32>,
    } else {
    }
    %c0 = arith.constant 0 : index
    %c0_1 = arith.constant 0 : index
    %3 = vector.load %arg2[%c0, %c0_1] : memref<16x32xf32, #tpu.memory_space<vmem>>, vector<16x32xf32>
    %c0_2 = arith.constant 0 : index
    %c0_3 = arith.constant 0 : index
    %4 = vector.load %arg3[%c0_2, %c0_3] : memref<16x32xf32, #tpu.memory_space<vmem>>, vector<16x32xf32>
    %cst = arith.constant dense<0xFF800000> : vector<16xf32>
    %5 = vector.multi_reduction <maximumf>, %4, %cst [1] : vector<16x32xf32> to vector<16xf32>
    %6 = vector.shape_cast %5 : vector<16xf32> to vector<16x1xf32>
    %7 = vector.broadcast %6 : vector<16x1xf32> to vector<16x32xf32>
    %8 = arith.subf %4, %7 : vector<16x32xf32>
    %9 = math.exp %8 : vector<16x32xf32>
    %cst_4 = arith.constant dense<0.000000e+00> : vector<16xf32>
    %10 = vector.multi_reduction <add>, %9, %cst_4 [1] : vector<16x32xf32> to vector<16xf32>
    %11 = vector.shape_cast %10 : vector<16xf32> to vector<16x1xf32>
    %12 = math.log %11 : vector<16x1xf32>
    %13 = arith.addf %6, %12 : vector<16x1xf32>
    %14 = vector.broadcast %13 : vector<16x1xf32> to vector<16x32xf32>
    %15 = arith.subf %14, %4 : vector<16x32xf32>
    %16 = arith.mulf %3, %15 : vector<16x32xf32>
    %c0_5 = arith.constant 0 : index
    %c0_6 = arith.constant 0 : index
    %17 = vector.load %arg6[%c0_5, %c0_6] : memref<8x32xf32, #tpu.memory_space<vmem>>, vector<8x32xf32>
    %18 = vector.shape_cast %16 : vector<16x32xf32> to vector<2x8x32xf32>
    %cst_7 = arith.constant dense<0.000000e+00> : vector<8x32xf32>
    %19 = vector.multi_reduction <add>, %18, %cst_7 [0] : vector<2x8x32xf32> to vector<8x32xf32>
    %20 = arith.addf %17, %19 : vector<8x32xf32>
    %c0_8 = arith.constant 0 : index
    %c0_9 = arith.constant 0 : index
    %21 = vector.load %arg6[%c0_8, %c0_9] : memref<8x32xf32, #tpu.memory_space<vmem>>, vector<8x32xf32>
    tpu.vector_store %arg6[%c0_8, %c0_9], %20 {strides = array<i32>} : memref<8x32xf32, #tpu.memory_space<vmem>>, vector<8x32xf32>,
    %cst_10 = arith.constant dense<0.000000e+00> : vector<16xf32>
    %22 = vector.multi_reduction <add>, %3, %cst_10 [1] : vector<16x32xf32> to vector<16xf32>
    %23 = vector.shape_cast %22 : vector<16xf32> to vector<16x1xf32>
    %cst_11 = arith.constant 1.000000e-03 : f32
    %24 = vector.broadcast %cst_11 : f32 to vector<16x1xf32>
    %25 = arith.cmpf ogt, %23, %24 : vector<16x1xf32>
    %26 = arith.extui %25 : vector<16x1xi1> to vector<16x1xi32>
    %27 = arith.sitofp %26 : vector<16x1xi32> to vector<16x1xf32>
    %c0_12 = arith.constant 0 : index
    %c0_13 = arith.constant 0 : index
    %28 = vector.load %arg7[%c0_12, %c0_13] : memref<8x1xf32, #tpu.memory_space<vmem>>, vector<8x1xf32>
    %29 = vector.shape_cast %27 : vector<16x1xf32> to vector<2x8x1xf32>
    %cst_14 = arith.constant dense<0.000000e+00> : vector<8x1xf32>
    %30 = vector.multi_reduction <add>, %29, %cst_14 [0] : vector<2x8x1xf32> to vector<8x1xf32>
    %31 = arith.addf %28, %30 : vector<8x1xf32>
    %c0_15 = arith.constant 0 : index
    %c0_16 = arith.constant 0 : index
    %32 = vector.load %arg7[%c0_15, %c0_16] : memref<8x1xf32, #tpu.memory_space<vmem>>, vector<8x1xf32>
    tpu.vector_store %arg7[%c0_15, %c0_16], %31 {strides = array<i32>} : memref<8x1xf32, #tpu.memory_space<vmem>>, vector<8x1xf32>,
    %c0_i32_17 = arith.constant 0 : i32
    %33 = arith.cmpi eq, %arg1, %c0_i32_17 : i32
    %34 = arith.extui %33 : i1 to i32
    %c0_i32_18 = arith.constant 0 : i32
    %35 = arith.cmpi ne, %34, %c0_i32_18 : i32
    scf.if %35 {
      %cst_19 = arith.constant 0.000000e+00 : f32
      %36 = vector.broadcast %cst_19 : f32 to vector<1x128xf32>
      %c0_20 = arith.constant 0 : index
      %c0_21 = arith.constant 0 : index
      %37 = vector.load %arg6[%c0_20, %c0_21] : memref<8x32xf32, #tpu.memory_space<vmem>>, vector<8x32xf32>
      %38 = vector.shape_cast %37 : vector<8x32xf32> to vector<1x8x32xf32>
      %cst_22 = arith.constant dense<0.000000e+00> : vector<1xf32>
      %39 = vector.multi_reduction <add>, %38, %cst_22 [1, 2] : vector<1x8x32xf32> to vector<1xf32>
      %40 = vector.shape_cast %39 : vector<1xf32> to vector<1x1x1xf32>
      %41 = vector.extract %40[0, 0, 0] : f32 from vector<1x1x1xf32>
      %42 = vector.broadcast %41 : f32 to vector<1x128xf32>
      %43 = arith.addf %36, %42 : vector<1x128xf32>
      %c0_23 = arith.constant 0 : index
      %c0_24 = arith.constant 0 : index
      %44 = vector.load %arg4[%c0_23, %c0_24] : memref<1x128xf32, #tpu.memory_space<vmem>>, vector<1x128xf32>
      tpu.vector_store %arg4[%c0_23, %c0_24], %43 {strides = array<i32>} : memref<1x128xf32, #tpu.memory_space<vmem>>, vector<1x128xf32>,
      %cst_25 = arith.constant 0.000000e+00 : f32
      %45 = vector.broadcast %cst_25 : f32 to vector<1x128xf32>
      %c0_26 = arith.constant 0 : index
      %c0_27 = arith.constant 0 : index
      %46 = vector.load %arg7[%c0_26, %c0_27] : memref<8x1xf32, #tpu.memory_space<vmem>>, vector<8x1xf32>
      %47 = vector.shape_cast %46 : vector<8x1xf32> to vector<1x8x1xf32>
      %cst_28 = arith.constant dense<0.000000e+00> : vector<1xf32>
      %48 = vector.multi_reduction <add>, %47, %cst_28 [1, 2] : vector<1x8x1xf32> to vector<1xf32>
      %49 = vector.shape_cast %48 : vector<1xf32> to vector<1x1x1xf32>
      %50 = vector.extract %49[0, 0, 0] : f32 from vector<1x1x1xf32>
      %51 = vector.broadcast %50 : f32 to vector<1x128xf32>
      %52 = arith.addf %45, %51 : vector<1x128xf32>
      %c0_29 = arith.constant 0 : index
      %c0_30 = arith.constant 0 : index
      %53 = vector.load %arg5[%c0_29, %c0_30] : memref<1x128xf32, #tpu.memory_space<vmem>>, vector<1x128xf32>
      tpu.vector_store %arg5[%c0_29, %c0_30], %52 {strides = array<i32>} : memref<1x128xf32, #tpu.memory_space<vmem>>, vector<1x128xf32>,
    } else {
    }
    return
  }
  func.func @transform_0(%arg0: i32, %arg1: i32) -> (i32, i32) {
    %c1_i32 = arith.constant 1 : i32
    %0 = arith.muli %arg0, %c1_i32 : i32
    %1 = arith.addi %0, %arg1 : i32
    %c0_i32 = arith.constant 0 : i32
    %c0_i32_0 = arith.constant 0 : i32
    return %1, %c0_i32 : i32, i32
  }
  func.func @transform_1(%arg0: i32, %arg1: i32) -> (i32, i32) {
    %c1_i32 = arith.constant 1 : i32
    %0 = arith.muli %arg0, %c1_i32 : i32
    %1 = arith.addi %0, %arg1 : i32
    %c0_i32 = arith.constant 0 : i32
    %c0_i32_0 = arith.constant 0 : i32
    return %1, %c0_i32 : i32, i32
  }
  func.func @transform_2(%arg0: i32, %arg1: i32) -> (i32, i32) {
    %c0_i32 = arith.constant 0 : i32
    %c0_i32_0 = arith.constant 0 : i32
    return %arg0, %c0_i32 : i32, i32
  }
  func.func @transform_3(%arg0: i32, %arg1: i32) -> (i32, i32) {
    %c0_i32 = arith.constant 0 : i32
    %c0_i32_0 = arith.constant 0 : i32
    return %arg0, %c0_i32 : i32, i32
  }
}

</mosaic_0001>

<bundles_post_ra>
// kernel: tpu_custom_call.1
= control target key start
LH: loop header
LB: loop body
LE: loop exit
PB: predicated region body
PF: predicated region fallthrough
CT: control target
= control target key end

     0   :  { %9 = vsyncpa [#allocation5], 0  ;;  %s394_s0 = inlined_call_operand.hbm [shape: f32[16,32], index: 0, kind: input, shape index: {}]   ;;  %s395_s1 = inlined_call_operand.hbm [shape: f32[16,32], index: 1, kind: input, shape index: {}]   ;;  %s396_s2 = inlined_call_operand.hbm [shape: f32[1,128], index: 2, kind: output, shape index: {0}]   ;;  %s397_s3 = inlined_call_operand.hbm [shape: f32[1,128], index: 3, kind: output, shape index: {1}]  }
   0x1   :  { %10 = vsyncpa [#allocation8], 0 }
   0x2   :  { %11 = vsyncpa [#allocation6], 0 }
   0x3   :  { %12 = vsyncpa [#allocation11], 0  ;;  %s297_s12 = smov [#allocation4]   ;;  %s201_s16 = scalar_lea.hbm %s394_s0, 256 }
   0x4   :  { %s22_s13 = sshll.u32 %s297_s12, 4  ;;  %p202_p0 = scmp.ne.s32.totalorder %s394_s0, %s201_s16  ;;  %s23_s13 = int_to_ptr.vmem [resolvable:$true] %s22_s13 }
   0x5   :  { %p205_p1 = scmp.lt.u32.totalorder %s201_s16, %s394_s0 }
   0x7   :  { %p207_p2 = pnand %p205_p1, %p202_p0 }
   0x9   :  { %210 = shalt.err (!%p207_p2)
}
   0xa   :  { %s211_s21 = scalar_lea.vmem %s23_s13, 256  ;;  %p216_p4 = scmp.lt.s32.totalorder %s23_s13, %s23_s13 }
   0xb   :  { %p212_p3 = scmp.ne.s32.totalorder %s23_s13, %s211_s21  ;;  %p217_p5 = scmp.lt.s32.totalorder %s211_s21, %s211_s21 }
   0xd   :  { %p218_p6 = por %p217_p5, %p216_p4 }
   0xf   :  { %p219_p7 = pnand %p218_p6, %p212_p3 }
  0x11   :  { %222 = shalt.err (!%p219_p7)
}
  0x12   :  { %s298_s22 = smov 128   ;;  %s299_s23 = smov 8  }
  0x13   :  { %28 = dma.hbm_to_vmem [thread:$0]  %s394_s0, 256, %s23_s13, [#allocation5], %s298_s22, %s298_s22, %s299_s23  }
  0x14   :  { %s300_s26 = smov [#allocation7]   ;;  %s223_s30 = scalar_lea.hbm %s395_s1, 256 }
  0x15   :  { %s38_s27 = sshll.u32 %s300_s26, 4  ;;  %p224_p8 = scmp.ne.s32.totalorder %s395_s1, %s223_s30  ;;  %s39_s27 = int_to_ptr.vmem [resolvable:$true] %s38_s27 }
  0x16   :  { %p227_p9 = scmp.lt.u32.totalorder %s223_s30, %s395_s1 }
  0x18   :  { %p229_p10 = pnand %p227_p9, %p224_p8 }
  0x1a   :  { %232 = shalt.err (!%p229_p10)
}
  0x1b   :  { %s233_s8 = scalar_lea.vmem %s39_s27, 256  ;;  %p238_p12 = scmp.lt.s32.totalorder %s39_s27, %s39_s27 }
  0x1c   :  { %p234_p11 = scmp.ne.s32.totalorder %s39_s27, %s233_s8  ;;  %p239_p13 = scmp.lt.s32.totalorder %s233_s8, %s233_s8 }
  0x1e   :  { %p240_p0 = por %p239_p13, %p238_p12 }
  0x20   :  { %p241_p1 = pnand %p240_p0, %p234_p11 }
  0x22   :  { %244 = shalt.err (!%p241_p1)
}
  0x23   :  { %44 = dma.hbm_to_vmem [thread:$0]  %s395_s1, 256, %s39_s27, [#allocation8], %s298_s22, %s298_s22, %s299_s23  }
  0x24   :  { %289 = dma.done.wait [#allocation5], 256  }
  0x25   :  { %290 = vsyncadd [#allocation5], 4294967040 }
  0x26   :  { %291 = dma.done.wait [#allocation8], 256  }
  0x27   :  { %292 = vsyncadd [#allocation8], 4294967040  ;;  %vm59_vm0 = vcmask 261120   ;;  %v65_v0 = vld [vmem:[#allocation7] sm:$0xff]  ;;  %v66_v1 = vld [vmem:[#allocation7 + $0x8] sm:$0xff]  ;;  %vm61_vm1 = vcmask 7168  }
  0x28   :  { %v68_v2 = vsel %vm59_vm0, %v65_v0, -inf  ;;  %v71_v3 = vsel %vm59_vm0, %v66_v1, -inf  ;;  %v63_v4 = vld [vmem:[#allocation4] sm:$0xff]  ;;  %v64_v15 = vld [vmem:[#allocation4 + $0x8] sm:$0xff]  ;;  %v301_v18 = vmov 0.0   ;;  %s302_s1 = smov [#allocation9]  }
  0x29   :  { %69 = vmax.xlane.f32.xlu0 %v68_v2  ;;  %v102_v5 = vsel %vm59_vm0, %v63_v4, 0.0  ;;  %v105_v17 = vsel %vm59_vm0, %v64_v15, 0.0  ;;  %60 = vst.msk [vmem:[#allocation2] sm:$0xff] %vm59_vm0, %v301_v18  ;;  %s156_s10 = sshll.u32 %s302_s1, 4  ;;  %s303_s11 = smov [#allocation10]   ;;  %s157_s10 = int_to_ptr.vmem [resolvable:$true] %s156_s10 }
  0x2a   :  { %62 = vst.msk [vmem:[#allocation3] sm:$0xff] %vm61_vm1, %v301_v18  ;;  %s166_s12 = sshll.u32 %s303_s11, 4  ;;  %s245_s15 = scalar_lea.vmem %s157_s10, 16  ;;  %s362_s12 = int_to_ptr.vmem [resolvable:$true] %s166_s12 }
  0x2b   :  { %p246_p2 = scmp.ne.s32.totalorder %s157_s10, %s245_s15  ;;  %s249_s16 = scalar_lea.vmem %s157_s10, 32 }
  0x2c   :  { %p250_p3 = scmp.lt.s32.totalorder %s157_s10, %s157_s10  ;;  %p251_p4 = scmp.lt.s32.totalorder %s249_s16, %s245_s15 }
  0x2d   :  { %72 = vmax.xlane.f32.xlu0 %v71_v3 }
  0x2e   :  { %p252_p5 = por %p251_p4, %p250_p3 }
  0x30   :  { %v96_v42 = vld [vmem:[#allocation2] sm:$0xff]  ;;  %p253_p6 = pnand %p252_p5, %p246_p2 }
  0x31   :  { %103 = vadd.xlane.f32.xlu0 %v102_v5  ;;  %v114_v25 = vld [vmem:[#allocation3] sm:$0xff] }
  0xb6   :  { %v70_v6 = vpop.xlane.xlu0 %69 }
  0xb7   :  { %v74_v7 = vsub.f32 %v65_v0, %v70_v6 }
  0xb9   :  { %v76_v8 = vmul.f32 1.442695, %v74_v7 }
  0xba   :  { %v73_v9 = vpop.xlane.xlu0 %72 }
  0xbb   :  { %193 = vpow2.f32 %v76_v8  ;;  %v75_v10 = vsub.f32 %v66_v1, %v73_v9 }
  0xbd   :  { %v78_v11 = vmul.f32 1.442695, %v75_v10 }
  0xbe   :  { %v104_v20 = vpop.xlane.xlu0 %103 }
  0xbf   :  { %195 = vpow2.f32 %v78_v11  ;;  %vm108_vm2 = vcmp.gt.f32.partialorder %v104_v20, 0.001 }
  0xc0   :  { %v180_v23 = vsel %vm108_vm2, 1.0, %v301_v18 }
  0xc5   :  { %v194_v12 = vpop.eup %193 }
  0xc6   :  { %v80_v13 = vsel %vm59_vm0, %v194_v12, 0.0 }
  0xc7   :  { %81 = vadd.xlane.f32.xlu1 %v80_v13 }
  0xc9   :  { %v196_v14 = vpop.eup %195 }
  0xca   :  { %v83_v16 = vsel %vm59_vm0, %v196_v14, 0.0 }
  0xcb   :  { %84 = vadd.xlane.f32.xlu1 %v83_v16 }
  0xcf   :  { %106 = vadd.xlane.f32.xlu1 %v105_v17 }
 0x154   :  { %v82_v19 = vpop.xlane.xlu1 %81 }
 0x155   :  { %197 = vlog2.f32 %v82_v19 }
 0x158   :  { %v85_v21 = vpop.xlane.xlu1 %84 }
 0x159   :  { %199 = vlog2.f32 %v85_v21 }
 0x15c   :  { %v107_v22 = vpop.xlane.xlu1 %106 }
 0x15d   :  { %vm109_vm3 = vcmp.gt.f32.partialorder %v107_v22, 0.001 }
 0x15e   :  { %v181_v24 = vsel %vm109_vm3, 1.0, %v301_v18 }
 0x15f   :  { %v198_v26 = vpop.eup %197  ;;  %v115_v27 = vadd.f32 %v181_v24, %v180_v23 }
 0x160   :  { %v87_v28 = vmul.f32 0.6931472, %v198_v26 }
 0x161   :  { %v116_v29 = vadd.f32 %v115_v27, %v114_v25 }
 0x162   :  { %v90_v30 = vadd.f32 %v87_v28, %v70_v6 }
 0x163   :  { %v200_v31 = vpop.eup %199  ;;  %118 = vst.msk [vmem:[#allocation3] sm:$0xff] %vm61_vm1, %v116_v29 }
 0x164   :  { %v92_v32 = vsub.f32 %v90_v30, %v65_v0  ;;  %v89_v33 = vmul.f32 0.6931472, %v200_v31 }
 0x166   :  { %v91_v34 = vadd.f32 %v89_v33, %v73_v9  ;;  %v94_v35 = vmul.f32 %v92_v32, %v63_v4 }
 0x168   :  { %v93_v36 = vsub.f32 %v91_v34, %v66_v1  ;;  %v97_v40 = vsel %vm59_vm0, %v94_v35, 0.0 }
 0x16a   :  { %v95_v37 = vmul.f32 %v93_v36, %v64_v15  ;;  %v136_v38 = vld [vmem:[#allocation3] sm:$0xff] }
 0x16b   :  { %v137_v39 = vsel %vm61_vm1, %v136_v38, 0.0 }
 0x16c   :  { %v98_v41 = vsel %vm59_vm0, %v95_v37, 0.0  ;;  %138 = vadd.xlane.f32.xlu1 %v137_v39 }
 0x16d   :  { %v99_v43 = vadd.f32 %v98_v41, %v97_v40 }
 0x16f   :  { %v100_v44 = vadd.f32 %v99_v43, %v96_v42 }
 0x171   :  { %101 = vst.msk [vmem:[#allocation2] sm:$0xff] %vm59_vm0, %v100_v44 }
 0x178   :  { %v122_v45 = vld [vmem:[#allocation2] sm:$0xff] }
 0x179   :  { %v123_v46 = vsel %vm59_vm0, %v122_v45, 0.0 }
 0x17a   :  { %124 = vadd.xlane.f32.xlu0 %v123_v46 }
 0x1f9   :  { %v139_v47 = vpop.xlane.xlu1 %138 }
 0x1fa   :  { %v140_v48 = vrot.slane %v139_v47, 4 }
 0x1fc   :  { %v141_v49 = vadd.f32 %v140_v48, %v139_v47 }
 0x1fe   :  { %v142_v50 = vrot.slane %v141_v49, 2 }
 0x200   :  { %v143_v54 = vadd.f32 %v142_v50, %v141_v49 }
 0x202   :  { %v144_v57 = vrot.slane %v143_v54, 1 }
 0x204   :  { %v145_v60 = vadd.f32 %v144_v57, %v143_v54 }
 0x207   :  { %v125_v51 = vpop.xlane.xlu0 %124 }
 0x208   :  { %v126_v52 = vrot.slane %v125_v51, 4 }
 0x20a   :  { %v127_v53 = vadd.f32 %v126_v52, %v125_v51 }
 0x20c   :  { %v128_v55 = vrot.slane %v127_v53, 2 }
 0x20e   :  { %v129_v56 = vadd.f32 %v128_v55, %v127_v53 }
 0x210   :  { %v130_v58 = vrot.slane %v129_v56, 1 }
 0x212   :  { %v131_v59 = vadd.f32 %v130_v58, %v129_v56 }
 0x214   :  { %182 = vpush %v131_v59 }
 0x215   :  { %184 = vpush %v145_v60 }
 0x245   :  { %s183_s13 = spop %182 }
 0x246   :  { %v133_v61 = vstv %s183_s13  ;;  %s185_s14 = spop %184 }
 0x247   :  { %135 = vst [vmem:[#allocation9] sm:$0x1] %v133_v61  ;;  %v147_v62 = vstv %s185_s14 }
 0x248   :  { %149 = vst [vmem:[#allocation10] sm:$0x1] %v147_v62 }
 0x249   :  { %256 = shalt.err (!%p253_p6)
}
 0x24a   :  { %s257_s19 = scalar_lea.hbm %s396_s2, 16 }
 0x24b   :  { %p258_p7 = scmp.ne.s32.totalorder %s396_s2, %s257_s19  ;;  %p261_p8 = scmp.lt.u32.totalorder %s257_s19, %s396_s2 }
 0x24d   :  { %p263_p9 = pnand %p261_p8, %p258_p7 }
 0x24f   :  { %266 = shalt.err (!%p263_p9)
}
 0x250   :  { %159 = dma.vmem_to_hbm [thread:$0]  %s157_s10, 16, %s396_s2, [#allocation6]  }
 0x251   :  { %s267_s26 = scalar_lea.vmem %s362_s12, 16  ;;  %s271_s27 = scalar_lea.vmem %s362_s12, 32 }
 0x252   :  { %p268_p10 = scmp.ne.s32.totalorder %s362_s12, %s267_s26  ;;  %p272_p11 = scmp.lt.s32.totalorder %s362_s12, %s362_s12 }
 0x253   :  { %p273_p12 = scmp.lt.s32.totalorder %s271_s27, %s267_s26 }
 0x255   :  { %p274_p13 = por %p273_p12, %p272_p11 }
 0x257   :  { %p275_p0 = pnand %p274_p13, %p268_p10 }
 0x259   :  { %278 = shalt.err (!%p275_p0)
}
 0x25a   :  { %s279_s30 = scalar_lea.hbm %s397_s3, 16 }
 0x25b   :  { %p280_p1 = scmp.ne.s32.totalorder %s397_s3, %s279_s30  ;;  %p283_p2 = scmp.lt.u32.totalorder %s279_s30, %s397_s3 }
 0x25d   :  { %p285_p3 = pnand %p283_p2, %p280_p1 }
 0x25f   :  { %288 = shalt.err (!%p285_p3)
}
 0x260   :  { %169 = dma.vmem_to_hbm [thread:$0]  %s362_s12, 16, %s397_s3, [#allocation11]  }
 0x261   :  { %293 = dma.done.wait [#allocation6], 16  }
 0x262   :  { %294 = vsyncadd [#allocation6], 4294967280 }
 0x263   :  { %295 = dma.done.wait [#allocation11], 16  }
 0x264   :  { %296 = vsyncadd [#allocation11], 4294967280 }
 0x265   :  { %176 = vsyncpa [#allocation5], 1 }
 0x266   :  { %177 = vsyncpa [#allocation8], 1 }
 0x267   :  { %178 = vsyncpa [#allocation6], 1 }
 0x268   :  { %179 = vsyncpa [#allocation11], 1 }

</bundles_post_ra>
